<compile_context>
chip_gen: v5e
topology: v5e:2x2
jax: 0.10.0
libtpu: 0.0.40
codegen_flags: <defaults>
</compile_context>

<pallas_src>
import jax
import jax.numpy as jnp
from jax.experimental import pallas as pl
from jax.experimental.pallas import tpu as pltpu


_DMA_SLOTS = 4          # DMAs kept in flight per grid step in the DMA path.
_MIN_PALLAS_BYTES = 256 * 1024
_TARGET_TILE_BYTES = 2 * 1024 * 1024   # per-buffer tile for the pipelined path


def _sublane_pack(itemsize: int) -> int:
    # 8 sublanes per 32-bit row; sub-32-bit dtypes pack along sublanes.
    return 8 * max(1, 4 // int(itemsize))


def _split_rows(num_rows: int, parts: int, align: int):
    """Split [0, num_rows) into <= parts contiguous chunks, starts align-aligned."""
    parts = max(1, min(parts, num_rows))
    chunk = -(-num_rows // parts)              # ceil
    chunk = -(-chunk // align) * align         # round up to sublane pack
    spans = []
    r = 0
    while r < num_rows:
        size = min(chunk, num_rows - r)
        spans.append((r, size))
        r += size
    return spans


# ---------------------------------------------------------------------------
# Primary path: strided HBM -> HBM DMA (no VMEM staging).
# ---------------------------------------------------------------------------
def _chomp_dma(x2: jax.Array, l_out: int) -> jax.Array:
    R, L = x2.shape
    itemsize = x2.dtype.itemsize
    sub = _sublane_pack(itemsize)

    # One grid step per TensorCore worth of rows (helps v7x's 2 TCs; on
    # v5e/v6e the second step is just one more cheap sequential iteration).
    cores = 2 if R >= 2 * sub else 1
    chunks = _split_rows(R, cores * _DMA_SLOTS, sub)
    per = -(-len(chunks) // cores)
    plans = [chunks[g * per:(g + 1) * per] for g in range(cores)]

    def kernel(x_hbm, o_hbm, sems):
        step = pl.program_id(0)
        for g, plan in enumerate(plans):
            if not plan:
                continue

            @pl.when(step == g)
            def _(plan=plan, g=g):
                def dma(idx):
                    r0, rows = plan[idx]            # static Python ints
                    return pltpu.make_async_copy(
                        x_hbm.at[r0:r0 + rows, 0:l_out],   # strided source window
                        o_hbm.at[r0:r0 + rows, 0:l_out],
                        sems.at[g, idx % _DMA_SLOTS],
                    )

                n = len(plan)
                for idx in range(n):                # static unroll, ring of sems
                    if idx >= _DMA_SLOTS:
                        dma(idx - _DMA_SLOTS).wait()
                    dma(idx).start()
                for idx in range(max(0, n - _DMA_SLOTS), n):
                    dma(idx).wait()

    return pl.pallas_call(
        kernel,
        out_shape=jax.ShapeDtypeStruct((R, l_out), x2.dtype),
        grid=(cores,),
        in_specs=[pl.BlockSpec(memory_space=pl.ANY)],
        out_specs=pl.BlockSpec(memory_space=pl.ANY),
        scratch_shapes=[pltpu.SemaphoreType.DMA((cores, _DMA_SLOTS))],
        compiler_params=pltpu.CompilerParams(
            dimension_semantics=("parallel",),
        ),
        cost_estimate=pl.CostEstimate(
            flops=0, transcendentals=0,
            bytes_accessed=2 * R * l_out * itemsize),
    )(x2)


# ---------------------------------------------------------------------------
# Fallback path: pipelined VMEM copy (byte-sized, lane-dense tiles).
# ---------------------------------------------------------------------------
def _copy_kernel(x_ref, o_ref):
    # Identical input/output block shapes & index maps: pure tile copy.
    o_ref[...] = x_ref[...]


def _chomp_pipelined(x2: jax.Array, l_out: int) -> jax.Array:
    R, L = x2.shape
    itemsize = x2.dtype.itemsize
    sub = _sublane_pack(itemsize)

    # Row tile: full extent when it fits (always legal; avoids a masked
    # remainder row block), otherwise 512 rows aligned to the sublane pack.
    row_cap = 512
    if R <= row_cap:
        tr = R
    else:
        tr = max(sub, (row_cap // sub) * sub)

    # Lane tile: byte-based so bf16/int8 get proportionally more lanes;
    # multiple of 128, never exceeding the lane-dense part of L_out.
    tl = _TARGET_TILE_BYTES // max(1, tr * itemsize)
    tl = max(128, (tl // 128) * 128)
    tl = min(tl, max(128, (l_out // 128) * 128))

    grid = (pl.cdiv(R, tr), pl.cdiv(l_out, tl))
    return pl.pallas_call(
        _copy_kernel,
        out_shape=jax.ShapeDtypeStruct((R, l_out), x2.dtype),
        grid=grid,
        in_specs=[pl.BlockSpec((tr, tl), lambda r, l: (r, l))],
        out_specs=pl.BlockSpec((tr, tl), lambda r, l: (r, l)),
        compiler_params=pltpu.CompilerParams(
            dimension_semantics=("parallel", "parallel"),
            vmem_limit_bytes=32 * 1024 * 1024,
        ),
        cost_estimate=pl.CostEstimate(
            flops=0, transcendentals=0,
            bytes_accessed=2 * R * l_out * itemsize),
    )(x2)


# ---------------------------------------------------------------------------
# Public wrapper: PyTorch-parity Chomp1d.forward.
# ---------------------------------------------------------------------------
def chomp1d(x: jax.Array, chomp_size: int) -> jax.Array:
    """Pallas equivalent of Chomp1d(chomp_size).forward(x), x of shape (N, C, L)."""
    N, C, L = x.shape

    # Exact PyTorch slicing parity (x[:, :, :-chomp_size]):
    if chomp_size == 0:
        return x[:, :, :0]                 # :-0 is an empty slice in PyTorch
    l_out = L - chomp_size if chomp_size > 0 else min(L, -chomp_size)
    if l_out <= 0:
        return x[:, :, :0]

    R = N * C
    itemsize = x.dtype.itemsize
    out_bytes = R * l_out * itemsize
    if R == 0 or l_out < 128 or out_bytes < _MIN_PALLAS_BYTES:
        # Tiny copy: launch/pipeline fixed costs dominate; a plain XLA slice
        # fuses into neighboring ops in a real TCN and is effectively free.
        return x[:, :, :l_out]

    # Flatten (N, C) into one row axis; free because L is the minor axis.
    x2 = x.reshape(R, L)
    try:
        out2 = _chomp_dma(x2, l_out)
    except Exception:
        # Strided HBM->HBM window descriptor not accepted on this target:
        # fall back to the pipelined VMEM-copy formulation.
        out2 = _chomp_pipelined(x2, l_out)
    return out2.reshape(N, C, l_out)


if __name__ == "__main__":
    key = jax.random.PRNGKey(0)
    k1, k2 = jax.random.split(key)

    # Case 1: small module-like shape (N=2, C=4, L=16) -> tiny path (XLA slice).
    x_small = jax.random.normal(k1, (2, 4, 16), dtype=jnp.float32)
    y_small = jax.block_until_ready(chomp1d(x_small, 3))
    assert y_small.shape == (2, 4, 13), y_small.shape
    assert jnp.array_equal(y_small, x_small[:, :, :-3]), "mismatch (tiny path)"

    # Case 2: big enough to take a Pallas path (HBM->HBM DMA, or the pipelined
    # fallback if the strided descriptor is rejected).
    x_big = jax.random.normal(k2, (4, 16, 2048), dtype=jnp.float32)
    y_big = jax.block_until_ready(chomp1d(x_big, 4))
    assert y_big.shape == (4, 16, 2044), y_big.shape
    assert jnp.array_equal(y_big, x_big[:, :, :-4]), "mismatch (pallas path)"

    # Validate both Pallas formulations explicitly so a Pallas kernel is
    # guaranteed to have run (and be checked) regardless of which path the
    # wrapper selected.
    x2 = x_big.reshape(64, 2048)
    y_pipe = jax.block_until_ready(_chomp_pipelined(x2, 2044))
    assert jnp.array_equal(y_pipe, x2[:, :2044]), "mismatch (pipelined path)"
    try:
        y_dma = jax.block_until_ready(_chomp_dma(x2, 2044))
    except Exception:
        pass  # strided HBM->HBM window not supported here; fallback covers it
    else:
        assert jnp.array_equal(y_dma, x2[:, :2044]), "mismatch (DMA path)"

    print("KERNEL_OK")
</pallas_src>

<mosaic_0001>
module attributes {stable_mosaic.version = 11 : i64} {
  func.func @kernel(%arg0: i32, %arg1: memref<64x2048xf32, #tpu.memory_space<any>>, %arg2: memref<64x2044xf32, #tpu.memory_space<any>>, %arg3: memref<2x4x!tpu.dma_semaphore, #tpu.memory_space<semaphore_mem>>) attributes {dimension_semantics = [#tpu.dimension_semantics<parallel>], iteration_bounds = array<i64: 2>, scalar_prefetch = 0 : i64, scratch_operands = 1 : i64, tpu.core_type = #tpu.core_type<tc>, window_params = [{}, {}]} {
    %c0_i32 = arith.constant 0 : i32
    %0 = arith.cmpi eq, %arg0, %c0_i32 : i32
    %1 = arith.extui %0 : i1 to i32
    %c0_i32_0 = arith.constant 0 : i32
    %2 = arith.cmpi ne, %1, %c0_i32_0 : i32
    scf.if %2 {
      %c0_i32_2 = arith.constant 0 : i32
      %c0_i32_3 = arith.constant 0 : i32
      %c0_i32_4 = arith.constant 0 : i32
      %c0_i32_5 = arith.constant 0 : i32
      %6 = tpu.memref_slice %arg1[%c0_i32_4, %c0_i32_5] : memref<64x2048xf32, #tpu.memory_space<any>> -> memref<8x2044xf32, #tpu.memory_space<any>>
      %c0_i32_6 = arith.constant 0 : i32
      %c0_i32_7 = arith.constant 0 : i32
      %7 = tpu.memref_slice %arg2[%c0_i32_6, %c0_i32_7] : memref<64x2044xf32, #tpu.memory_space<any>> -> memref<8x2044xf32, #tpu.memory_space<any>>
      %8 = tpu.memref_slice %arg3[%c0_i32_2, %c0_i32_3] : memref<2x4x!tpu.dma_semaphore, #tpu.memory_space<semaphore_mem>> -> memref<1x1x!tpu.dma_semaphore, #tpu.memory_space<semaphore_mem>>
      %9 = tpu.memref_squeeze %8 : memref<1x1x!tpu.dma_semaphore, #tpu.memory_space<semaphore_mem>> -> memref<!tpu.dma_semaphore, #tpu.memory_space<semaphore_mem>>
      tpu.enqueue_dma source(%6 : memref<8x2044xf32, #tpu.memory_space<any>>) target(%7 : memref<8x2044xf32, #tpu.memory_space<any>>) target_semaphore(%9 : memref<!tpu.dma_semaphore, #tpu.memory_space<semaphore_mem>>)
      %c0_i32_8 = arith.constant 0 : i32
      %c1_i32_9 = arith.constant 1 : i32
      %c8_i32 = arith.constant 8 : i32
      %c0_i32_10 = arith.constant 0 : i32
      %10 = tpu.memref_slice %arg1[%c8_i32, %c0_i32_10] : memref<64x2048xf32, #tpu.memory_space<any>> -> memref<8x2044xf32, #tpu.memory_space<any>>
      %c8_i32_11 = arith.constant 8 : i32
      %c0_i32_12 = arith.constant 0 : i32
      %11 = tpu.memref_slice %arg2[%c8_i32_11, %c0_i32_12] : memref<64x2044xf32, #tpu.memory_space<any>> -> memref<8x2044xf32, #tpu.memory_space<any>>
      %12 = tpu.memref_slice %arg3[%c0_i32_8, %c1_i32_9] : memref<2x4x!tpu.dma_semaphore, #tpu.memory_space<semaphore_mem>> -> memref<1x1x!tpu.dma_semaphore, #tpu.memory_space<semaphore_mem>>
      %13 = tpu.memref_squeeze %12 : memref<1x1x!tpu.dma_semaphore, #tpu.memory_space<semaphore_mem>> -> memref<!tpu.dma_semaphore, #tpu.memory_space<semaphore_mem>>
      tpu.enqueue_dma source(%10 : memref<8x2044xf32, #tpu.memory_space<any>>) target(%11 : memref<8x2044xf32, #tpu.memory_space<any>>) target_semaphore(%13 : memref<!tpu.dma_semaphore, #tpu.memory_space<semaphore_mem>>)
      %c0_i32_13 = arith.constant 0 : i32
      %c2_i32 = arith.constant 2 : i32
      %c16_i32 = arith.constant 16 : i32
      %c0_i32_14 = arith.constant 0 : i32
      %14 = tpu.memref_slice %arg1[%c16_i32, %c0_i32_14] : memref<64x2048xf32, #tpu.memory_space<any>> -> memref<8x2044xf32, #tpu.memory_space<any>>
      %c16_i32_15 = arith.constant 16 : i32
      %c0_i32_16 = arith.constant 0 : i32
      %15 = tpu.memref_slice %arg2[%c16_i32_15, %c0_i32_16] : memref<64x2044xf32, #tpu.memory_space<any>> -> memref<8x2044xf32, #tpu.memory_space<any>>
      %16 = tpu.memref_slice %arg3[%c0_i32_13, %c2_i32] : memref<2x4x!tpu.dma_semaphore, #tpu.memory_space<semaphore_mem>> -> memref<1x1x!tpu.dma_semaphore, #tpu.memory_space<semaphore_mem>>
      %17 = tpu.memref_squeeze %16 : memref<1x1x!tpu.dma_semaphore, #tpu.memory_space<semaphore_mem>> -> memref<!tpu.dma_semaphore, #tpu.memory_space<semaphore_mem>>
      tpu.enqueue_dma source(%14 : memref<8x2044xf32, #tpu.memory_space<any>>) target(%15 : memref<8x2044xf32, #tpu.memory_space<any>>) target_semaphore(%17 : memref<!tpu.dma_semaphore, #tpu.memory_space<semaphore_mem>>)
      %c0_i32_17 = arith.constant 0 : i32
      %c3_i32 = arith.constant 3 : i32
      %c24_i32 = arith.constant 24 : i32
      %c0_i32_18 = arith.constant 0 : i32
      %18 = tpu.memref_slice %arg1[%c24_i32, %c0_i32_18] : memref<64x2048xf32, #tpu.memory_space<any>> -> memref<8x2044xf32, #tpu.memory_space<any>>
      %c24_i32_19 = arith.constant 24 : i32
      %c0_i32_20 = arith.constant 0 : i32
      %19 = tpu.memref_slice %arg2[%c24_i32_19, %c0_i32_20] : memref<64x2044xf32, #tpu.memory_space<any>> -> memref<8x2044xf32, #tpu.memory_space<any>>
      %20 = tpu.memref_slice %arg3[%c0_i32_17, %c3_i32] : memref<2x4x!tpu.dma_semaphore, #tpu.memory_space<semaphore_mem>> -> memref<1x1x!tpu.dma_semaphore, #tpu.memory_space<semaphore_mem>>
      %21 = tpu.memref_squeeze %20 : memref<1x1x!tpu.dma_semaphore, #tpu.memory_space<semaphore_mem>> -> memref<!tpu.dma_semaphore, #tpu.memory_space<semaphore_mem>>
      tpu.enqueue_dma source(%18 : memref<8x2044xf32, #tpu.memory_space<any>>) target(%19 : memref<8x2044xf32, #tpu.memory_space<any>>) target_semaphore(%21 : memref<!tpu.dma_semaphore, #tpu.memory_space<semaphore_mem>>)
      %c0_i32_21 = arith.constant 0 : i32
      %c0_i32_22 = arith.constant 0 : i32
      %c0_i32_23 = arith.constant 0 : i32
      %c0_i32_24 = arith.constant 0 : i32
      %22 = tpu.memref_slice %arg1[%c0_i32_23, %c0_i32_24] : memref<64x2048xf32, #tpu.memory_space<any>> -> memref<8x2044xf32, #tpu.memory_space<any>>
      %c0_i32_25 = arith.constant 0 : i32
      %c0_i32_26 = arith.constant 0 : i32
      %23 = tpu.memref_slice %arg2[%c0_i32_25, %c0_i32_26] : memref<64x2044xf32, #tpu.memory_space<any>> -> memref<8x2044xf32, #tpu.memory_space<any>>
      %24 = tpu.memref_slice %arg3[%c0_i32_21, %c0_i32_22] : memref<2x4x!tpu.dma_semaphore, #tpu.memory_space<semaphore_mem>> -> memref<1x1x!tpu.dma_semaphore, #tpu.memory_space<semaphore_mem>>
      %25 = tpu.memref_squeeze %24 : memref<1x1x!tpu.dma_semaphore, #tpu.memory_space<semaphore_mem>> -> memref<!tpu.dma_semaphore, #tpu.memory_space<semaphore_mem>>
      tpu.wait_dma2 semaphore(%25 : memref<!tpu.dma_semaphore, #tpu.memory_space<semaphore_mem>>) src(%22 : memref<8x2044xf32, #tpu.memory_space<any>>) dst(%23 : memref<8x2044xf32, #tpu.memory_space<any>>)
      %c0_i32_27 = arith.constant 0 : i32
      %c1_i32_28 = arith.constant 1 : i32
      %c8_i32_29 = arith.constant 8 : i32
      %c0_i32_30 = arith.constant 0 : i32
      %26 = tpu.memref_slice %arg1[%c8_i32_29, %c0_i32_30] : memref<64x2048xf32, #tpu.memory_space<any>> -> memref<8x2044xf32, #tpu.memory_space<any>>
      %c8_i32_31 = arith.constant 8 : i32
      %c0_i32_32 = arith.constant 0 : i32
      %27 = tpu.memref_slice %arg2[%c8_i32_31, %c0_i32_32] : memref<64x2044xf32, #tpu.memory_space<any>> -> memref<8x2044xf32, #tpu.memory_space<any>>
      %28 = tpu.memref_slice %arg3[%c0_i32_27, %c1_i32_28] : memref<2x4x!tpu.dma_semaphore, #tpu.memory_space<semaphore_mem>> -> memref<1x1x!tpu.dma_semaphore, #tpu.memory_space<semaphore_mem>>
      %29 = tpu.memref_squeeze %28 : memref<1x1x!tpu.dma_semaphore, #tpu.memory_space<semaphore_mem>> -> memref<!tpu.dma_semaphore, #tpu.memory_space<semaphore_mem>>
      tpu.wait_dma2 semaphore(%29 : memref<!tpu.dma_semaphore, #tpu.memory_space<semaphore_mem>>) src(%26 : memref<8x2044xf32, #tpu.memory_space<any>>) dst(%27 : memref<8x2044xf32, #tpu.memory_space<any>>)
      %c0_i32_33 = arith.constant 0 : i32
      %c2_i32_34 = arith.constant 2 : i32
      %c16_i32_35 = arith.constant 16 : i32
      %c0_i32_36 = arith.constant 0 : i32
      %30 = tpu.memref_slice %arg1[%c16_i32_35, %c0_i32_36] : memref<64x2048xf32, #tpu.memory_space<any>> -> memref<8x2044xf32, #tpu.memory_space<any>>
      %c16_i32_37 = arith.constant 16 : i32
      %c0_i32_38 = arith.constant 0 : i32
      %31 = tpu.memref_slice %arg2[%c16_i32_37, %c0_i32_38] : memref<64x2044xf32, #tpu.memory_space<any>> -> memref<8x2044xf32, #tpu.memory_space<any>>
      %32 = tpu.memref_slice %arg3[%c0_i32_33, %c2_i32_34] : memref<2x4x!tpu.dma_semaphore, #tpu.memory_space<semaphore_mem>> -> memref<1x1x!tpu.dma_semaphore, #tpu.memory_space<semaphore_mem>>
      %33 = tpu.memref_squeeze %32 : memref<1x1x!tpu.dma_semaphore, #tpu.memory_space<semaphore_mem>> -> memref<!tpu.dma_semaphore, #tpu.memory_space<semaphore_mem>>
      tpu.wait_dma2 semaphore(%33 : memref<!tpu.dma_semaphore, #tpu.memory_space<semaphore_mem>>) src(%30 : memref<8x2044xf32, #tpu.memory_space<any>>) dst(%31 : memref<8x2044xf32, #tpu.memory_space<any>>)
      %c0_i32_39 = arith.constant 0 : i32
      %c3_i32_40 = arith.constant 3 : i32
      %c24_i32_41 = arith.constant 24 : i32
      %c0_i32_42 = arith.constant 0 : i32
      %34 = tpu.memref_slice %arg1[%c24_i32_41, %c0_i32_42] : memref<64x2048xf32, #tpu.memory_space<any>> -> memref<8x2044xf32, #tpu.memory_space<any>>
      %c24_i32_43 = arith.constant 24 : i32
      %c0_i32_44 = arith.constant 0 : i32
      %35 = tpu.memref_slice %arg2[%c24_i32_43, %c0_i32_44] : memref<64x2044xf32, #tpu.memory_space<any>> -> memref<8x2044xf32, #tpu.memory_space<any>>
      %36 = tpu.memref_slice %arg3[%c0_i32_39, %c3_i32_40] : memref<2x4x!tpu.dma_semaphore, #tpu.memory_space<semaphore_mem>> -> memref<1x1x!tpu.dma_semaphore, #tpu.memory_space<semaphore_mem>>
      %37 = tpu.memref_squeeze %36 : memref<1x1x!tpu.dma_semaphore, #tpu.memory_space<semaphore_mem>> -> memref<!tpu.dma_semaphore, #tpu.memory_space<semaphore_mem>>
      tpu.wait_dma2 semaphore(%37 : memref<!tpu.dma_semaphore, #tpu.memory_space<semaphore_mem>>) src(%34 : memref<8x2044xf32, #tpu.memory_space<any>>) dst(%35 : memref<8x2044xf32, #tpu.memory_space<any>>)
    } else {
    }
    %c1_i32 = arith.constant 1 : i32
    %3 = arith.cmpi eq, %arg0, %c1_i32 : i32
    %4 = arith.extui %3 : i1 to i32
    %c0_i32_1 = arith.constant 0 : i32
    %5 = arith.cmpi ne, %4, %c0_i32_1 : i32
    scf.if %5 {
      %c1_i32_2 = arith.constant 1 : i32
      %c0_i32_3 = arith.constant 0 : i32
      %c32_i32 = arith.constant 32 : i32
      %c0_i32_4 = arith.constant 0 : i32
      %6 = tpu.memref_slice %arg1[%c32_i32, %c0_i32_4] : memref<64x2048xf32, #tpu.memory_space<any>> -> memref<8x2044xf32, #tpu.memory_space<any>>
      %c32_i32_5 = arith.constant 32 : i32
      %c0_i32_6 = arith.constant 0 : i32
      %7 = tpu.memref_slice %arg2[%c32_i32_5, %c0_i32_6] : memref<64x2044xf32, #tpu.memory_space<any>> -> memref<8x2044xf32, #tpu.memory_space<any>>
      %8 = tpu.memref_slice %arg3[%c1_i32_2, %c0_i32_3] : memref<2x4x!tpu.dma_semaphore, #tpu.memory_space<semaphore_mem>> -> memref<1x1x!tpu.dma_semaphore, #tpu.memory_space<semaphore_mem>>
      %9 = tpu.memref_squeeze %8 : memref<1x1x!tpu.dma_semaphore, #tpu.memory_space<semaphore_mem>> -> memref<!tpu.dma_semaphore, #tpu.memory_space<semaphore_mem>>
      tpu.enqueue_dma source(%6 : memref<8x2044xf32, #tpu.memory_space<any>>) target(%7 : memref<8x2044xf32, #tpu.memory_space<any>>) target_semaphore(%9 : memref<!tpu.dma_semaphore, #tpu.memory_space<semaphore_mem>>)
      %c1_i32_7 = arith.constant 1 : i32
      %c1_i32_8 = arith.constant 1 : i32
      %c40_i32 = arith.constant 40 : i32
      %c0_i32_9 = arith.constant 0 : i32
      %10 = tpu.memref_slice %arg1[%c40_i32, %c0_i32_9] : memref<64x2048xf32, #tpu.memory_space<any>> -> memref<8x2044xf32, #tpu.memory_space<any>>
      %c40_i32_10 = arith.constant 40 : i32
      %c0_i32_11 = arith.constant 0 : i32
      %11 = tpu.memref_slice %arg2[%c40_i32_10, %c0_i32_11] : memref<64x2044xf32, #tpu.memory_space<any>> -> memref<8x2044xf32, #tpu.memory_space<any>>
      %12 = tpu.memref_slice %arg3[%c1_i32_7, %c1_i32_8] : memref<2x4x!tpu.dma_semaphore, #tpu.memory_space<semaphore_mem>> -> memref<1x1x!tpu.dma_semaphore, #tpu.memory_space<semaphore_mem>>
      %13 = tpu.memref_squeeze %12 : memref<1x1x!tpu.dma_semaphore, #tpu.memory_space<semaphore_mem>> -> memref<!tpu.dma_semaphore, #tpu.memory_space<semaphore_mem>>
      tpu.enqueue_dma source(%10 : memref<8x2044xf32, #tpu.memory_space<any>>) target(%11 : memref<8x2044xf32, #tpu.memory_space<any>>) target_semaphore(%13 : memref<!tpu.dma_semaphore, #tpu.memory_space<semaphore_mem>>)
      %c1_i32_12 = arith.constant 1 : i32
      %c2_i32 = arith.constant 2 : i32
      %c48_i32 = arith.constant 48 : i32
      %c0_i32_13 = arith.constant 0 : i32
      %14 = tpu.memref_slice %arg1[%c48_i32, %c0_i32_13] : memref<64x2048xf32, #tpu.memory_space<any>> -> memref<8x2044xf32, #tpu.memory_space<any>>
      %c48_i32_14 = arith.constant 48 : i32
      %c0_i32_15 = arith.constant 0 : i32
      %15 = tpu.memref_slice %arg2[%c48_i32_14, %c0_i32_15] : memref<64x2044xf32, #tpu.memory_space<any>> -> memref<8x2044xf32, #tpu.memory_space<any>>
      %16 = tpu.memref_slice %arg3[%c1_i32_12, %c2_i32] : memref<2x4x!tpu.dma_semaphore, #tpu.memory_space<semaphore_mem>> -> memref<1x1x!tpu.dma_semaphore, #tpu.memory_space<semaphore_mem>>
      %17 = tpu.memref_squeeze %16 : memref<1x1x!tpu.dma_semaphore, #tpu.memory_space<semaphore_mem>> -> memref<!tpu.dma_semaphore, #tpu.memory_space<semaphore_mem>>
      tpu.enqueue_dma source(%14 : memref<8x2044xf32, #tpu.memory_space<any>>) target(%15 : memref<8x2044xf32, #tpu.memory_space<any>>) target_semaphore(%17 : memref<!tpu.dma_semaphore, #tpu.memory_space<semaphore_mem>>)
      %c1_i32_16 = arith.constant 1 : i32
      %c3_i32 = arith.constant 3 : i32
      %c56_i32 = arith.constant 56 : i32
      %c0_i32_17 = arith.constant 0 : i32
      %18 = tpu.memref_slice %arg1[%c56_i32, %c0_i32_17] : memref<64x2048xf32, #tpu.memory_space<any>> -> memref<8x2044xf32, #tpu.memory_space<any>>
      %c56_i32_18 = arith.constant 56 : i32
      %c0_i32_19 = arith.constant 0 : i32
      %19 = tpu.memref_slice %arg2[%c56_i32_18, %c0_i32_19] : memref<64x2044xf32, #tpu.memory_space<any>> -> memref<8x2044xf32, #tpu.memory_space<any>>
      %20 = tpu.memref_slice %arg3[%c1_i32_16, %c3_i32] : memref<2x4x!tpu.dma_semaphore, #tpu.memory_space<semaphore_mem>> -> memref<1x1x!tpu.dma_semaphore, #tpu.memory_space<semaphore_mem>>
      %21 = tpu.memref_squeeze %20 : memref<1x1x!tpu.dma_semaphore, #tpu.memory_space<semaphore_mem>> -> memref<!tpu.dma_semaphore, #tpu.memory_space<semaphore_mem>>
      tpu.enqueue_dma source(%18 : memref<8x2044xf32, #tpu.memory_space<any>>) target(%19 : memref<8x2044xf32, #tpu.memory_space<any>>) target_semaphore(%21 : memref<!tpu.dma_semaphore, #tpu.memory_space<semaphore_mem>>)
      %c1_i32_20 = arith.constant 1 : i32
      %c0_i32_21 = arith.constant 0 : i32
      %c32_i32_22 = arith.constant 32 : i32
      %c0_i32_23 = arith.constant 0 : i32
      %22 = tpu.memref_slice %arg1[%c32_i32_22, %c0_i32_23] : memref<64x2048xf32, #tpu.memory_space<any>> -> memref<8x2044xf32, #tpu.memory_space<any>>
      %c32_i32_24 = arith.constant 32 : i32
      %c0_i32_25 = arith.constant 0 : i32
      %23 = tpu.memref_slice %arg2[%c32_i32_24, %c0_i32_25] : memref<64x2044xf32, #tpu.memory_space<any>> -> memref<8x2044xf32, #tpu.memory_space<any>>
      %24 = tpu.memref_slice %arg3[%c1_i32_20, %c0_i32_21] : memref<2x4x!tpu.dma_semaphore, #tpu.memory_space<semaphore_mem>> -> memref<1x1x!tpu.dma_semaphore, #tpu.memory_space<semaphore_mem>>
      %25 = tpu.memref_squeeze %24 : memref<1x1x!tpu.dma_semaphore, #tpu.memory_space<semaphore_mem>> -> memref<!tpu.dma_semaphore, #tpu.memory_space<semaphore_mem>>
      tpu.wait_dma2 semaphore(%25 : memref<!tpu.dma_semaphore, #tpu.memory_space<semaphore_mem>>) src(%22 : memref<8x2044xf32, #tpu.memory_space<any>>) dst(%23 : memref<8x2044xf32, #tpu.memory_space<any>>)
      %c1_i32_26 = arith.constant 1 : i32
      %c1_i32_27 = arith.constant 1 : i32
      %c40_i32_28 = arith.constant 40 : i32
      %c0_i32_29 = arith.constant 0 : i32
      %26 = tpu.memref_slice %arg1[%c40_i32_28, %c0_i32_29] : memref<64x2048xf32, #tpu.memory_space<any>> -> memref<8x2044xf32, #tpu.memory_space<any>>
      %c40_i32_30 = arith.constant 40 : i32
      %c0_i32_31 = arith.constant 0 : i32
      %27 = tpu.memref_slice %arg2[%c40_i32_30, %c0_i32_31] : memref<64x2044xf32, #tpu.memory_space<any>> -> memref<8x2044xf32, #tpu.memory_space<any>>
      %28 = tpu.memref_slice %arg3[%c1_i32_26, %c1_i32_27] : memref<2x4x!tpu.dma_semaphore, #tpu.memory_space<semaphore_mem>> -> memref<1x1x!tpu.dma_semaphore, #tpu.memory_space<semaphore_mem>>
      %29 = tpu.memref_squeeze %28 : memref<1x1x!tpu.dma_semaphore, #tpu.memory_space<semaphore_mem>> -> memref<!tpu.dma_semaphore, #tpu.memory_space<semaphore_mem>>
      tpu.wait_dma2 semaphore(%29 : memref<!tpu.dma_semaphore, #tpu.memory_space<semaphore_mem>>) src(%26 : memref<8x2044xf32, #tpu.memory_space<any>>) dst(%27 : memref<8x2044xf32, #tpu.memory_space<any>>)
      %c1_i32_32 = arith.constant 1 : i32
      %c2_i32_33 = arith.constant 2 : i32
      %c48_i32_34 = arith.constant 48 : i32
      %c0_i32_35 = arith.constant 0 : i32
      %30 = tpu.memref_slice %arg1[%c48_i32_34, %c0_i32_35] : memref<64x2048xf32, #tpu.memory_space<any>> -> memref<8x2044xf32, #tpu.memory_space<any>>
      %c48_i32_36 = arith.constant 48 : i32
      %c0_i32_37 = arith.constant 0 : i32
      %31 = tpu.memref_slice %arg2[%c48_i32_36, %c0_i32_37] : memref<64x2044xf32, #tpu.memory_space<any>> -> memref<8x2044xf32, #tpu.memory_space<any>>
      %32 = tpu.memref_slice %arg3[%c1_i32_32, %c2_i32_33] : memref<2x4x!tpu.dma_semaphore, #tpu.memory_space<semaphore_mem>> -> memref<1x1x!tpu.dma_semaphore, #tpu.memory_space<semaphore_mem>>
      %33 = tpu.memref_squeeze %32 : memref<1x1x!tpu.dma_semaphore, #tpu.memory_space<semaphore_mem>> -> memref<!tpu.dma_semaphore, #tpu.memory_space<semaphore_mem>>
      tpu.wait_dma2 semaphore(%33 : memref<!tpu.dma_semaphore, #tpu.memory_space<semaphore_mem>>) src(%30 : memref<8x2044xf32, #tpu.memory_space<any>>) dst(%31 : memref<8x2044xf32, #tpu.memory_space<any>>)
      %c1_i32_38 = arith.constant 1 : i32
      %c3_i32_39 = arith.constant 3 : i32
      %c56_i32_40 = arith.constant 56 : i32
      %c0_i32_41 = arith.constant 0 : i32
      %34 = tpu.memref_slice %arg1[%c56_i32_40, %c0_i32_41] : memref<64x2048xf32, #tpu.memory_space<any>> -> memref<8x2044xf32, #tpu.memory_space<any>>
      %c56_i32_42 = arith.constant 56 : i32
      %c0_i32_43 = arith.constant 0 : i32
      %35 = tpu.memref_slice %arg2[%c56_i32_42, %c0_i32_43] : memref<64x2044xf32, #tpu.memory_space<any>> -> memref<8x2044xf32, #tpu.memory_space<any>>
      %36 = tpu.memref_slice %arg3[%c1_i32_38, %c3_i32_39] : memref<2x4x!tpu.dma_semaphore, #tpu.memory_space<semaphore_mem>> -> memref<1x1x!tpu.dma_semaphore, #tpu.memory_space<semaphore_mem>>
      %37 = tpu.memref_squeeze %36 : memref<1x1x!tpu.dma_semaphore, #tpu.memory_space<semaphore_mem>> -> memref<!tpu.dma_semaphore, #tpu.memory_space<semaphore_mem>>
      tpu.wait_dma2 semaphore(%37 : memref<!tpu.dma_semaphore, #tpu.memory_space<semaphore_mem>>) src(%34 : memref<8x2044xf32, #tpu.memory_space<any>>) dst(%35 : memref<8x2044xf32, #tpu.memory_space<any>>)
    } else {
    }
    return
  }
}

module attributes {stable_mosaic.version = 11 : i64} {
  func.func @_copy_kernel(%arg0: i32, %arg1: i32, %arg2: memref<64x1920xf32, #tpu.memory_space<vmem>>, %arg3: memref<64x1920xf32, #tpu.memory_space<vmem>>) attributes {dimension_semantics = [#tpu.dimension_semantics<parallel>, #tpu.dimension_semantics<parallel>], iteration_bounds = array<i64: 1, 2>, scalar_prefetch = 0 : i64, scratch_operands = 0 : i64, tpu.core_type = #tpu.core_type<tc>, window_params = [{transform_indices = @transform_0, window_bounds = array<i64: 64, 1920>}, {transform_indices = @transform_1, window_bounds = array<i64: 64, 1920>}]} {
    %c0 = arith.constant 0 : index
    %c0_0 = arith.constant 0 : index
    %0 = vector.load %arg2[%c0, %c0_0] : memref<64x1920xf32, #tpu.memory_space<vmem>>, vector<64x1920xf32>
    %c0_1 = arith.constant 0 : index
    %c0_2 = arith.constant 0 : index
    %1 = vector.load %arg3[%c0_1, %c0_2] : memref<64x1920xf32, #tpu.memory_space<vmem>>, vector<64x1920xf32>
    tpu.vector_store %arg3[%c0_1, %c0_2], %0 {strides = array<i32>} : memref<64x1920xf32, #tpu.memory_space<vmem>>, vector<64x1920xf32>,
    return
  }
  func.func @transform_0(%arg0: i32, %arg1: i32) -> (i32, i32) {
    %c0_i32 = arith.constant 0 : i32
    return %arg0, %arg1 : i32, i32
  }
  func.func @transform_1(%arg0: i32, %arg1: i32) -> (i32, i32) {
    %c0_i32 = arith.constant 0 : i32
    return %arg0, %arg1 : i32, i32
  }
}

</mosaic_0001>

<bundles_post_ra>
// kernel: tpu_custom_call.1
= control target key start
LH: loop header
LB: loop body
LE: loop exit
PB: predicated region body
PF: predicated region fallthrough
CT: control target
= control target key end

     0   :  { %6 = vsyncpa [#allocation3], 0  ;;  %s1198_s0 = inlined_call_operand.hbm [shape: f32[64,2048], index: 0, kind: input, shape index: {}]   ;;  %s1199_s1 = inlined_call_operand.hbm [shape: f32[64,2044], index: 1, kind: output, shape index: {}]  }
   0x1   :  { %8 = vsyncpa [#allocation3 + $0x1], 0 }
   0x2   :  { %9 = vsyncpa [#allocation4], 0 }
   0x3   :  { %11 = vsyncpa [#allocation4 + $0x1], 0  ;;  %s766_s6 = smov 0   ;;  %s768_s7 = smov 0  }
   0x4   :  { %s770_s8 = smov 0   ;;  %s772_s9 = smov 0  }
   0x5   :  { %s774_s10 = smov 0   ;;  %s776_s11 = smov 0  }
   0x6 LB: > { %s530_s12 = sadd.s32 4294967295, %s748_s11   ;;  %s531_s13 = sadd.s32 4294967294, %s748_s11   ;;  %s748_s11 = sphi %s776_s11, %s17_s11   ;;  %s744_s10 = sphi %s774_s10, %s1209_s10   ;;  %s740_s9 = sphi %s772_s9, %s1208_s9   ;;  %s736_s8 = sphi %s770_s8, %s1207_s8   ;;  %s732_s7 = sphi %s768_s7, %s1206_s7   ;;  %s728_s6 = sphi %s766_s6, %s1205_s6  }
   0x7   : > { %s26_s14 = sadd.s32 1, %s744_s10  ;;  %s38_s15 = sadd.s32 1, %s736_s8 }
   0x8   : > { %p27_p0 = scmp.ge.s32.totalorder %s26_s14, 2  ;;  %p45_p1 = scmp.ne.s32.totalorder %s736_s8, %s732_s7 }
   0x9   : > { %p46_p2 = scmp.eq.s32.totalorder %s748_s11, 0  ;;  %p51_p3 = scmp.ne.s32.totalorder %s732_s7, %s728_s6 }
   0xa   : > { %s1211_s14 = smov (%p27_p0, %s26_s14), 0  ;;  %p52_p5 = scmp.eq.s32.totalorder %s530_s12, 0 }
   0xb   : > { %p47_p4 = por %p46_p2, %p45_p1  ;;  %s34_s16 = ssub.s32 %s744_s10, %s1211_s14 }
   0xc   : > { %p77_p6 = scmp.eq.s32.totalorder %s530_s12, 1  ;;  %p36_p7 = scmp.eq.s32.totalorder %s34_s16, 0 }
   0xd   : > { %p809_p8 = por %p52_p5, %p51_p3  ;;  %p83_p10 = scmp.eq.s32.totalorder %s531_s13, 1 }
   0xe   : > { %p813_p9 = por %p77_p6, %p45_p1  ;;  %p533_p12 = scmp.ge.s32.totalorder %s748_s11, 2 }
   0xf   : > { %s818_s19 = scalar_select %p36_p7, %s736_s8, %s38_s15  }
  0x10   : > { %p820_p11 = por %p83_p10, %p51_p3  ;;  %99 = sbr.rel (%p533_p12) target bundleno = 59 (0x3b), region = 16 }
  0x15   : > { %102 = sbr.rel (!%p47_p4) target bundleno = 59 (0x3b), region = 20  ;;  %s103_s21 = sand.u32 (%p47_p4), 1, %s736_s8  }
  0x16   : > { %s109_s22 = smul.u32 (%p47_p4), 15, %s744_s10  ;;  %s832_s28 = scalar_lea.sflag (%p47_p4), [#allocation3], %s103_s21 }
  0x17   : > { %s555_s23 = smul.u32 (%p47_p4), 960, %s103_s21 }
  0x18   : > { %s110_s24 = ssub.s32 (%p47_p4), 16, %s109_s22 }
  0x19   : > { %p111_p13 = scmp.lt.s32.totalorder (%p47_p4), %s110_s24, 15  ;;  %s107_s29 = scalar_lea.vmem (%p47_p4), [#allocation2], %s555_s23 }
  0x1b   : > { %s1213_s24 = smov (!%p111_p13, %s110_s24), 15 }
  0x1c   : > { %s534_s25 = sshll.u32 %s1213_s24, 6 }
  0x1d   : > { %s114_s26 = ssub.s32 960, %s534_s25 }
  0x1e   : > { %s115_s27 = sshll.u32 %s114_s26, 4 }
  0x1f   : > { %116 = vsyncadd %s832_s28, %s115_s27  ;;  %p835_p0 = scmp.ne.s32.totalorder %s534_s25, 0  ;;  %s549_s2 = smul.u32 120, %s744_s10 }
  0x20   : > { %s537_s3 = sshll.u32 %s1213_s24, 3  ;;  %s841_s4 = sshll.u32 %s107_s29, 4  ;;  %s127_s4 = int_to_ptr.vmem [resolvable:$true] %s841_s4 }
  0x21   : > { %s121_s13 = scalar_lea.hbm %s1198_s0, %s549_s2  ;;  %s551_s16 = sshll.u32 %s1213_s24, 10 }
  0x22   : > { %s124_s15 = sshll.u32 %s121_s13, 4  ;;  %s618_s22 = sshrl.u32 %s551_s16, 4  ;;  %s848_s15 = int_to_ptr.hbm [resolvable:$true] %s124_s15 }
  0x23   : > { %s616_s21 = sshra.s32 %s848_s15, 4  ;;  %s627_s27 = scalar_lea.hbm %s1198_s0, 1024  ;;  %s617_s21 = int_to_ptr.hbm [resolvable:$true] %s616_s21 }
  0x24   : > { %s623_s23 = scalar_lea.hbm %s617_s21, %s618_s22 }
  0x25   : > { %p624_p1 = scmp.ne.s32.totalorder %s617_s21, %s623_s23  ;;  %p629_p4 = scmp.lt.s32.totalorder %s627_s27, %s623_s23 }
  0x27   : > { %p625_p2 = pnand %p624_p1, %p835_p0 }
  0x29   : > { %p626_p3 = pneg %p625_p2 }
  0x2b   : > { %p631_p5 = pnand %p629_p4, %p626_p3 }
  0x2d   : > { %634 = shalt.err (!%p631_p5)
}
  0x2e   : > { %s635_s29 = sshra.s32 %s127_s4, 4  ;;  %s750_s5 = smov [#allocation2]   ;;  %s636_s29 = int_to_ptr.vmem [resolvable:$true] %s635_s29 }
  0x2f   : > { %s642_s2 = scalar_lea.vmem %s636_s29, %s618_s22  ;;  %s646_s12 = scalar_lea.vmem %s750_s5, 1920 }
  0x30   : > { %p643_p6 = scmp.ne.s32.totalorder %s636_s29, %s642_s2  ;;  %p648_p13 = scmp.lt.s32.totalorder %s646_s12, %s642_s2 }
  0x32   : > { %p644_p7 = pnand %p643_p6, %p835_p0 }
  0x34   : > { %p645_p10 = pneg %p644_p7 }
  0x36   : > { %p650_p1 = pnand %p648_p13, %p645_p10 }
  0x38   : > { %653 = shalt.err (!%p650_p1)
}
  0x39   : > { %s751_s13 = smov 2048   ;;  %s752_s21 = smov 1920  }
  0x3a   : > { %132 = dma.hbm_to_vmem [thread:$0]  (%p835_p0), %s848_s15, %s551_s16, %s127_s4, %s832_s28, %s751_s13, %s752_s21, %s537_s3  }
  0x3b PF: > { %p540_p2 = scmp.ge.s32.totalorder %s748_s11, 1  ;;  %p134_p3 = scmp.lt.s32.totalorder %s748_s11, 3 }
  0x3d   : > { %p135_p4 = pnand %p540_p2, %p134_p3 }
  0x3e   : > { %s875_s22 = sand.u32 (!%p135_p4), 1, %s732_s7  }
  0x3f   : > { %138 = sbr.rel (%p135_p4) target bundleno = 222 (0xde), region = 24  ;;  %s141_s30 = scalar_lea.sflag (!%p135_p4), [#allocation3], %s875_s22 }
  0x40   : > { %s556_s23 = smul.u32 (!%p135_p4), 960, %s875_s22 }
  0x42   : > { %s879_s25 = scalar_lea.vmem (!%p135_p4), [#allocation2], %s556_s23 }
  0x44   : > { %719 = dma.done.wait (%p809_p8), %s141_s30, 15360  }
  0x45   : > { %721 = vsyncadd (%p809_p8), %s141_s30, 4294951936  ;;  %v176_v0 = vld [vmem:[%s879_s25] sm:$0xff]  ;;  %v177_v1 = vld [vmem:[%s879_s25 + $0x8] sm:$0xff]  ;;  %s888_s24 = scalar_lea.vmem [#allocation5], %s556_s23  ;;  %s417_s17 = scalar_lea.sflag [#allocation4], %s875_s22 }
  0x46   : > { %v178_v2 = vld [vmem:[%s879_s25 + $0x10] sm:$0xff]  ;;  %296 = vst [vmem:[%s888_s24] sm:$0xff] %v176_v0  ;;  %v179_v3 = vld [vmem:[%s879_s25 + $0x18] sm:$0xff]  ;;  %v180_v4 = vld [vmem:[%s879_s25 + $0x20] sm:$0xff]  ;;  %s425_s28 = smul.u32 (%p813_p9), 15, %s740_s9 }
  0x47   : > { %297 = vst [vmem:[%s888_s24 + $0x8] sm:$0xff] %v177_v1  ;;  %v181_v5 = vld [vmem:[%s879_s25 + $0x28] sm:$0xff]  ;;  %v182_v6 = vld [vmem:[%s879_s25 + $0x30] sm:$0xff]  ;;  %v183_v7 = vld [vmem:[%s879_s25 + $0x38] sm:$0xff] }
  0x48   : > { %298 = vst [vmem:[%s888_s24 + $0x10] sm:$0xff] %v178_v2  ;;  %v184_v8 = vld [vmem:[%s879_s25 + $0x40] sm:$0xff]  ;;  %v185_v9 = vld [vmem:[%s879_s25 + $0x48] sm:$0xff]  ;;  %v186_v10 = vld [vmem:[%s879_s25 + $0x50] sm:$0xff]  ;;  %s426_s3 = ssub.s32 (%p813_p9), 16, %s425_s28 }
  0x49   : > { %299 = vst [vmem:[%s888_s24 + $0x18] sm:$0xff] %v179_v3  ;;  %v187_v11 = vld [vmem:[%s879_s25 + $0x58] sm:$0xff]  ;;  %v188_v12 = vld [vmem:[%s879_s25 + $0x60] sm:$0xff]  ;;  %v189_v13 = vld [vmem:[%s879_s25 + $0x68] sm:$0xff]  ;;  %p427_p8 = scmp.lt.s32.totalorder (%p813_p9), %s426_s3, 15 }
  0x4a   : > { %300 = vst [vmem:[%s888_s24 + $0x20] sm:$0xff] %v180_v4  ;;  %v190_v14 = vld [vmem:[%s879_s25 + $0x70] sm:$0xff]  ;;  %v191_v15 = vld [vmem:[%s879_s25 + $0x78] sm:$0xff]  ;;  %v192_v16 = vld [vmem:[%s879_s25 + $0x80] sm:$0xff] }
  0x4b   : > { %301 = vst [vmem:[%s888_s24 + $0x28] sm:$0xff] %v181_v5  ;;  %v193_v17 = vld [vmem:[%s879_s25 + $0x88] sm:$0xff]  ;;  %v194_v18 = vld [vmem:[%s879_s25 + $0x90] sm:$0xff]  ;;  %v195_v19 = vld [vmem:[%s879_s25 + $0x98] sm:$0xff] }
  0x4c   : > { %302 = vst [vmem:[%s888_s24 + $0x30] sm:$0xff] %v182_v6  ;;  %v196_v20 = vld [vmem:[%s879_s25 + $0xa0] sm:$0xff]  ;;  %v197_v21 = vld [vmem:[%s879_s25 + $0xa8] sm:$0xff]  ;;  %v198_v22 = vld [vmem:[%s879_s25 + $0xb0] sm:$0xff] }
  0x4d   : > { %303 = vst [vmem:[%s888_s24 + $0x38] sm:$0xff] %v183_v7  ;;  %v199_v23 = vld [vmem:[%s879_s25 + $0xb8] sm:$0xff]  ;;  %v200_v24 = vld [vmem:[%s879_s25 + $0xc0] sm:$0xff]  ;;  %v201_v25 = vld [vmem:[%s879_s25 + $0xc8] sm:$0xff] }
  0x4e   : > { %304 = vst [vmem:[%s888_s24 + $0x40] sm:$0xff] %v184_v8  ;;  %v202_v26 = vld [vmem:[%s879_s25 + $0xd0] sm:$0xff]  ;;  %v203_v27 = vld [vmem:[%s879_s25 + $0xd8] sm:$0xff]  ;;  %v204_v28 = vld [vmem:[%s879_s25 + $0xe0] sm:$0xff] }
  0x4f   : > { %305 = vst [vmem:[%s888_s24 + $0x48] sm:$0xff] %v185_v9  ;;  %v205_v29 = vld [vmem:[%s879_s25 + $0xe8] sm:$0xff]  ;;  %v206_v30 = vld [vmem:[%s879_s25 + $0xf0] sm:$0xff]  ;;  %v207_v31 = vld [vmem:[%s879_s25 + $0xf8] sm:$0xff] }
  0x50   : > { %306 = vst [vmem:[%s888_s24 + $0x50] sm:$0xff] %v186_v10  ;;  %v208_v32 = vld [vmem:[%s879_s25 + $0x100] sm:$0xff]  ;;  %v209_v33 = vld [vmem:[%s879_s25 + $0x108] sm:$0xff]  ;;  %v210_v34 = vld [vmem:[%s879_s25 + $0x110] sm:$0xff] }
  0x51   : > { %307 = vst [vmem:[%s888_s24 + $0x58] sm:$0xff] %v187_v11  ;;  %v211_v35 = vld [vmem:[%s879_s25 + $0x118] sm:$0xff]  ;;  %v212_v36 = vld [vmem:[%s879_s25 + $0x120] sm:$0xff]  ;;  %v213_v37 = vld [vmem:[%s879_s25 + $0x128] sm:$0xff] }
  0x52   : > { %308 = vst [vmem:[%s888_s24 + $0x60] sm:$0xff] %v188_v12  ;;  %v214_v38 = vld [vmem:[%s879_s25 + $0x130] sm:$0xff]  ;;  %v215_v39 = vld [vmem:[%s879_s25 + $0x138] sm:$0xff]  ;;  %v216_v40 = vld [vmem:[%s879_s25 + $0x140] sm:$0xff] }
  0x53   : > { %309 = vst [vmem:[%s888_s24 + $0x68] sm:$0xff] %v189_v13  ;;  %v217_v41 = vld [vmem:[%s879_s25 + $0x148] sm:$0xff]  ;;  %v218_v42 = vld [vmem:[%s879_s25 + $0x150] sm:$0xff]  ;;  %v219_v43 = vld [vmem:[%s879_s25 + $0x158] sm:$0xff] }
  0x54   : > { %310 = vst [vmem:[%s888_s24 + $0x70] sm:$0xff] %v190_v14  ;;  %v220_v44 = vld [vmem:[%s879_s25 + $0x160] sm:$0xff]  ;;  %v221_v45 = vld [vmem:[%s879_s25 + $0x168] sm:$0xff]  ;;  %v222_v46 = vld [vmem:[%s879_s25 + $0x170] sm:$0xff] }
  0x55   : > { %311 = vst [vmem:[%s888_s24 + $0x78] sm:$0xff] %v191_v15  ;;  %v223_v47 = vld [vmem:[%s879_s25 + $0x178] sm:$0xff]  ;;  %v224_v48 = vld [vmem:[%s879_s25 + $0x180] sm:$0xff]  ;;  %v225_v49 = vld [vmem:[%s879_s25 + $0x188] sm:$0xff] }
  0x56   : > { %312 = vst [vmem:[%s888_s24 + $0x80] sm:$0xff] %v192_v16  ;;  %v226_v50 = vld [vmem:[%s879_s25 + $0x190] sm:$0xff]  ;;  %v227_v51 = vld [vmem:[%s879_s25 + $0x198] sm:$0xff]  ;;  %v228_v52 = vld [vmem:[%s879_s25 + $0x1a0] sm:$0xff] }
  0x57   : > { %313 = vst [vmem:[%s888_s24 + $0x88] sm:$0xff] %v193_v17  ;;  %v229_v53 = vld [vmem:[%s879_s25 + $0x1a8] sm:$0xff]  ;;  %v230_v54 = vld [vmem:[%s879_s25 + $0x1b0] sm:$0xff]  ;;  %v231_v55 = vld [vmem:[%s879_s25 + $0x1b8] sm:$0xff] }
  0x58   : > { %314 = vst [vmem:[%s888_s24 + $0x90] sm:$0xff] %v194_v18  ;;  %v232_v56 = vld [vmem:[%s879_s25 + $0x1c0] sm:$0xff]  ;;  %v233_v57 = vld [vmem:[%s879_s25 + $0x1c8] sm:$0xff]  ;;  %v234_v58 = vld [vmem:[%s879_s25 + $0x1d0] sm:$0xff] }
  0x59   : > { %315 = vst [vmem:[%s888_s24 + $0x98] sm:$0xff] %v195_v19  ;;  %v235_v59 = vld [vmem:[%s879_s25 + $0x1d8] sm:$0xff]  ;;  %v236_v60 = vld [vmem:[%s879_s25 + $0x1e0] sm:$0xff]  ;;  %v237_v61 = vld [vmem:[%s879_s25 + $0x1e8] sm:$0xff] }
  0x5a   : > { %316 = vst [vmem:[%s888_s24 + $0xa0] sm:$0xff] %v196_v20  ;;  %v238_v62 = vld [vmem:[%s879_s25 + $0x1f0] sm:$0xff]  ;;  %v239_v63 = vld [vmem:[%s879_s25 + $0x1f8] sm:$0xff]  ;;  %v240_v0 = vld [vmem:[%s879_s25 + $0x200] sm:$0xff] }
  0x5b   : > { %317 = vst [vmem:[%s888_s24 + $0xa8] sm:$0xff] %v197_v21  ;;  %v241_v1 = vld [vmem:[%s879_s25 + $0x208] sm:$0xff]  ;;  %v242_v2 = vld [vmem:[%s879_s25 + $0x210] sm:$0xff]  ;;  %v243_v3 = vld [vmem:[%s879_s25 + $0x218] sm:$0xff] }
  0x5c   : > { %318 = vst [vmem:[%s888_s24 + $0xb0] sm:$0xff] %v198_v22  ;;  %v244_v4 = vld [vmem:[%s879_s25 + $0x220] sm:$0xff]  ;;  %v245_v5 = vld [vmem:[%s879_s25 + $0x228] sm:$0xff]  ;;  %v246_v6 = vld [vmem:[%s879_s25 + $0x230] sm:$0xff] }
  0x5d   : > { %319 = vst [vmem:[%s888_s24 + $0xb8] sm:$0xff] %v199_v23  ;;  %v247_v7 = vld [vmem:[%s879_s25 + $0x238] sm:$0xff]  ;;  %v248_v8 = vld [vmem:[%s879_s25 + $0x240] sm:$0xff]  ;;  %v249_v9 = vld [vmem:[%s879_s25 + $0x248] sm:$0xff] }
  0x5e   : > { %320 = vst [vmem:[%s888_s24 + $0xc0] sm:$0xff] %v200_v24  ;;  %v250_v10 = vld [vmem:[%s879_s25 + $0x250] sm:$0xff]  ;;  %v251_v11 = vld [vmem:[%s879_s25 + $0x258] sm:$0xff]  ;;  %v252_v12 = vld [vmem:[%s879_s25 + $0x260] sm:$0xff] }
  0x5f   : > { %321 = vst [vmem:[%s888_s24 + $0xc8] sm:$0xff] %v201_v25  ;;  %v253_v13 = vld [vmem:[%s879_s25 + $0x268] sm:$0xff]  ;;  %v254_v14 = vld [vmem:[%s879_s25 + $0x270] sm:$0xff]  ;;  %v255_v15 = vld [vmem:[%s879_s25 + $0x278] sm:$0xff] }
  0x60   : > { %322 = vst [vmem:[%s888_s24 + $0xd0] sm:$0xff] %v202_v26  ;;  %v256_v16 = vld [vmem:[%s879_s25 + $0x280] sm:$0xff]  ;;  %v257_v17 = vld [vmem:[%s879_s25 + $0x288] sm:$0xff]  ;;  %v258_v18 = vld [vmem:[%s879_s25 + $0x290] sm:$0xff] }
  0x61   : > { %323 = vst [vmem:[%s888_s24 + $0xd8] sm:$0xff] %v203_v27  ;;  %v259_v19 = vld [vmem:[%s879_s25 + $0x298] sm:$0xff]  ;;  %v260_v20 = vld [vmem:[%s879_s25 + $0x2a0] sm:$0xff]  ;;  %v261_v21 = vld [vmem:[%s879_s25 + $0x2a8] sm:$0xff] }
  0x62   : > { %324 = vst [vmem:[%s888_s24 + $0xe0] sm:$0xff] %v204_v28  ;;  %v262_v22 = vld [vmem:[%s879_s25 + $0x2b0] sm:$0xff]  ;;  %v263_v23 = vld [vmem:[%s879_s25 + $0x2b8] sm:$0xff]  ;;  %v264_v24 = vld [vmem:[%s879_s25 + $0x2c0] sm:$0xff] }
  0x63   : > { %325 = vst [vmem:[%s888_s24 + $0xe8] sm:$0xff] %v205_v29  ;;  %v265_v25 = vld [vmem:[%s879_s25 + $0x2c8] sm:$0xff]  ;;  %v266_v26 = vld [vmem:[%s879_s25 + $0x2d0] sm:$0xff]  ;;  %v267_v27 = vld [vmem:[%s879_s25 + $0x2d8] sm:$0xff] }
  0x64   : > { %326 = vst [vmem:[%s888_s24 + $0xf0] sm:$0xff] %v206_v30  ;;  %v268_v28 = vld [vmem:[%s879_s25 + $0x2e0] sm:$0xff]  ;;  %v269_v29 = vld [vmem:[%s879_s25 + $0x2e8] sm:$0xff]  ;;  %v270_v30 = vld [vmem:[%s879_s25 + $0x2f0] sm:$0xff] }
  0x65   : > { %327 = vst [vmem:[%s888_s24 + $0xf8] sm:$0xff] %v207_v31  ;;  %v271_v31 = vld [vmem:[%s879_s25 + $0x2f8] sm:$0xff] }
  0x66   : > { %328 = vst [vmem:[%s888_s24 + $0x100] sm:$0xff] %v208_v32  ;;  %v272_v32 = vld [vmem:[%s879_s25 + $0x300] sm:$0xff] }
  0x67   : > { %329 = vst [vmem:[%s888_s24 + $0x108] sm:$0xff] %v209_v33  ;;  %v273_v33 = vld [vmem:[%s879_s25 + $0x308] sm:$0xff] }
  0x68   : > { %330 = vst [vmem:[%s888_s24 + $0x110] sm:$0xff] %v210_v34  ;;  %v274_v34 = vld [vmem:[%s879_s25 + $0x310] sm:$0xff] }
  0x69   : > { %331 = vst [vmem:[%s888_s24 + $0x118] sm:$0xff] %v211_v35  ;;  %v275_v35 = vld [vmem:[%s879_s25 + $0x318] sm:$0xff] }
  0x6a   : > { %332 = vst [vmem:[%s888_s24 + $0x120] sm:$0xff] %v212_v36  ;;  %v276_v36 = vld [vmem:[%s879_s25 + $0x320] sm:$0xff] }
  0x6b   : > { %333 = vst [vmem:[%s888_s24 + $0x128] sm:$0xff] %v213_v37  ;;  %v277_v37 = vld [vmem:[%s879_s25 + $0x328] sm:$0xff] }
  0x6c   : > { %334 = vst [vmem:[%s888_s24 + $0x130] sm:$0xff] %v214_v38  ;;  %v278_v38 = vld [vmem:[%s879_s25 + $0x330] sm:$0xff] }
  0x6d   : > { %335 = vst [vmem:[%s888_s24 + $0x138] sm:$0xff] %v215_v39  ;;  %v279_v39 = vld [vmem:[%s879_s25 + $0x338] sm:$0xff] }
  0x6e   : > { %336 = vst [vmem:[%s888_s24 + $0x140] sm:$0xff] %v216_v40  ;;  %v280_v40 = vld [vmem:[%s879_s25 + $0x340] sm:$0xff] }
  0x6f   : > { %337 = vst [vmem:[%s888_s24 + $0x148] sm:$0xff] %v217_v41  ;;  %v281_v41 = vld [vmem:[%s879_s25 + $0x348] sm:$0xff] }
  0x70   : > { %338 = vst [vmem:[%s888_s24 + $0x150] sm:$0xff] %v218_v42  ;;  %v282_v42 = vld [vmem:[%s879_s25 + $0x350] sm:$0xff] }
  0x71   : > { %339 = vst [vmem:[%s888_s24 + $0x158] sm:$0xff] %v219_v43  ;;  %v283_v43 = vld [vmem:[%s879_s25 + $0x358] sm:$0xff] }
  0x72   : > { %340 = vst [vmem:[%s888_s24 + $0x160] sm:$0xff] %v220_v44  ;;  %v284_v44 = vld [vmem:[%s879_s25 + $0x360] sm:$0xff] }
  0x73   : > { %341 = vst [vmem:[%s888_s24 + $0x168] sm:$0xff] %v221_v45  ;;  %v285_v45 = vld [vmem:[%s879_s25 + $0x368] sm:$0xff] }
  0x74   : > { %342 = vst [vmem:[%s888_s24 + $0x170] sm:$0xff] %v222_v46  ;;  %v286_v46 = vld [vmem:[%s879_s25 + $0x370] sm:$0xff] }
  0x75   : > { %343 = vst [vmem:[%s888_s24 + $0x178] sm:$0xff] %v223_v47  ;;  %v287_v47 = vld [vmem:[%s879_s25 + $0x378] sm:$0xff] }
  0x76   : > { %344 = vst [vmem:[%s888_s24 + $0x180] sm:$0xff] %v224_v48  ;;  %v288_v48 = vld [vmem:[%s879_s25 + $0x380] sm:$0xff] }
  0x77   : > { %345 = vst [vmem:[%s888_s24 + $0x188] sm:$0xff] %v225_v49  ;;  %v289_v49 = vld [vmem:[%s879_s25 + $0x388] sm:$0xff] }
  0x78   : > { %346 = vst [vmem:[%s888_s24 + $0x190] sm:$0xff] %v226_v50  ;;  %v290_v50 = vld [vmem:[%s879_s25 + $0x390] sm:$0xff] }
  0x79   : > { %347 = vst [vmem:[%s888_s24 + $0x198] sm:$0xff] %v227_v51  ;;  %v291_v51 = vld [vmem:[%s879_s25 + $0x398] sm:$0xff] }
  0x7a   : > { %348 = vst [vmem:[%s888_s24 + $0x1a0] sm:$0xff] %v228_v52  ;;  %v292_v52 = vld [vmem:[%s879_s25 + $0x3a0] sm:$0xff] }
  0x7b   : > { %349 = vst [vmem:[%s888_s24 + $0x1a8] sm:$0xff] %v229_v53  ;;  %v293_v53 = vld [vmem:[%s879_s25 + $0x3a8] sm:$0xff] }
  0x7c   : > { %350 = vst [vmem:[%s888_s24 + $0x1b0] sm:$0xff] %v230_v54  ;;  %v294_v54 = vld [vmem:[%s879_s25 + $0x3b0] sm:$0xff] }
  0x7d   : > { %351 = vst [vmem:[%s888_s24 + $0x1b8] sm:$0xff] %v231_v55  ;;  %v295_v55 = vld [vmem:[%s879_s25 + $0x3b8] sm:$0xff] }
  0x7e   : > { %352 = vst [vmem:[%s888_s24 + $0x1c0] sm:$0xff] %v232_v56 }
  0x7f   : > { %353 = vst [vmem:[%s888_s24 + $0x1c8] sm:$0xff] %v233_v57 }
  0x80   : > { %354 = vst [vmem:[%s888_s24 + $0x1d0] sm:$0xff] %v234_v58 }
  0x81   : > { %355 = vst [vmem:[%s888_s24 + $0x1d8] sm:$0xff] %v235_v59 }
  0x82   : > { %356 = vst [vmem:[%s888_s24 + $0x1e0] sm:$0xff] %v236_v60 }
  0x83   : > { %357 = vst [vmem:[%s888_s24 + $0x1e8] sm:$0xff] %v237_v61 }
  0x84   : > { %358 = vst [vmem:[%s888_s24 + $0x1f0] sm:$0xff] %v238_v62 }
  0x85   : > { %359 = vst [vmem:[%s888_s24 + $0x1f8] sm:$0xff] %v239_v63 }
  0x86   : > { %360 = vst [vmem:[%s888_s24 + $0x200] sm:$0xff] %v240_v0 }
  0x87   : > { %361 = vst [vmem:[%s888_s24 + $0x208] sm:$0xff] %v241_v1 }
  0x88   : > { %362 = vst [vmem:[%s888_s24 + $0x210] sm:$0xff] %v242_v2 }
  0x89   : > { %363 = vst [vmem:[%s888_s24 + $0x218] sm:$0xff] %v243_v3 }
  0x8a   : > { %364 = vst [vmem:[%s888_s24 + $0x220] sm:$0xff] %v244_v4 }
  0x8b   : > { %365 = vst [vmem:[%s888_s24 + $0x228] sm:$0xff] %v245_v5 }
  0x8c   : > { %366 = vst [vmem:[%s888_s24 + $0x230] sm:$0xff] %v246_v6 }
  0x8d   : > { %367 = vst [vmem:[%s888_s24 + $0x238] sm:$0xff] %v247_v7 }
  0x8e   : > { %368 = vst [vmem:[%s888_s24 + $0x240] sm:$0xff] %v248_v8 }
  0x8f   : > { %369 = vst [vmem:[%s888_s24 + $0x248] sm:$0xff] %v249_v9 }
  0x90   : > { %370 = vst [vmem:[%s888_s24 + $0x250] sm:$0xff] %v250_v10 }
  0x91   : > { %371 = vst [vmem:[%s888_s24 + $0x258] sm:$0xff] %v251_v11 }
  0x92   : > { %372 = vst [vmem:[%s888_s24 + $0x260] sm:$0xff] %v252_v12 }
  0x93   : > { %373 = vst [vmem:[%s888_s24 + $0x268] sm:$0xff] %v253_v13 }
  0x94   : > { %374 = vst [vmem:[%s888_s24 + $0x270] sm:$0xff] %v254_v14 }
  0x95   : > { %375 = vst [vmem:[%s888_s24 + $0x278] sm:$0xff] %v255_v15 }
  0x96   : > { %376 = vst [vmem:[%s888_s24 + $0x280] sm:$0xff] %v256_v16 }
  0x97   : > { %377 = vst [vmem:[%s888_s24 + $0x288] sm:$0xff] %v257_v17 }
  0x98   : > { %378 = vst [vmem:[%s888_s24 + $0x290] sm:$0xff] %v258_v18 }
  0x99   : > { %379 = vst [vmem:[%s888_s24 + $0x298] sm:$0xff] %v259_v19 }
  0x9a   : > { %380 = vst [vmem:[%s888_s24 + $0x2a0] sm:$0xff] %v260_v20 }
  0x9b   : > { %381 = vst [vmem:[%s888_s24 + $0x2a8] sm:$0xff] %v261_v21 }
  0x9c   : > { %382 = vst [vmem:[%s888_s24 + $0x2b0] sm:$0xff] %v262_v22 }
  0x9d   : > { %383 = vst [vmem:[%s888_s24 + $0x2b8] sm:$0xff] %v263_v23 }
  0x9e   : > { %384 = vst [vmem:[%s888_s24 + $0x2c0] sm:$0xff] %v264_v24 }
  0x9f   : > { %385 = vst [vmem:[%s888_s24 + $0x2c8] sm:$0xff] %v265_v25 }
  0xa0   : > { %386 = vst [vmem:[%s888_s24 + $0x2d0] sm:$0xff] %v266_v26 }
  0xa1   : > { %387 = vst [vmem:[%s888_s24 + $0x2d8] sm:$0xff] %v267_v27 }
  0xa2   : > { %388 = vst [vmem:[%s888_s24 + $0x2e0] sm:$0xff] %v268_v28 }
  0xa3   : > { %389 = vst [vmem:[%s888_s24 + $0x2e8] sm:$0xff] %v269_v29 }
  0xa4   : > { %390 = vst [vmem:[%s888_s24 + $0x2f0] sm:$0xff] %v270_v30 }
  0xa5   : > { %391 = vst [vmem:[%s888_s24 + $0x2f8] sm:$0xff] %v271_v31 }
  0xa6   : > { %392 = vst [vmem:[%s888_s24 + $0x300] sm:$0xff] %v272_v32 }
  0xa7   : > { %393 = vst [vmem:[%s888_s24 + $0x308] sm:$0xff] %v273_v33 }
  0xa8   : > { %394 = vst [vmem:[%s888_s24 + $0x310] sm:$0xff] %v274_v34 }
  0xa9   : > { %395 = vst [vmem:[%s888_s24 + $0x318] sm:$0xff] %v275_v35 }
  0xaa   : > { %396 = vst [vmem:[%s888_s24 + $0x320] sm:$0xff] %v276_v36 }
  0xab   : > { %397 = vst [vmem:[%s888_s24 + $0x328] sm:$0xff] %v277_v37 }
  0xac   : > { %398 = vst [vmem:[%s888_s24 + $0x330] sm:$0xff] %v278_v38 }
  0xad   : > { %399 = vst [vmem:[%s888_s24 + $0x338] sm:$0xff] %v279_v39 }
  0xae   : > { %400 = vst [vmem:[%s888_s24 + $0x340] sm:$0xff] %v280_v40 }
  0xaf   : > { %401 = vst [vmem:[%s888_s24 + $0x348] sm:$0xff] %v281_v41 }
  0xb0   : > { %402 = vst [vmem:[%s888_s24 + $0x350] sm:$0xff] %v282_v42 }
  0xb1   : > { %403 = vst [vmem:[%s888_s24 + $0x358] sm:$0xff] %v283_v43 }
  0xb2   : > { %404 = vst [vmem:[%s888_s24 + $0x360] sm:$0xff] %v284_v44 }
  0xb3   : > { %405 = vst [vmem:[%s888_s24 + $0x368] sm:$0xff] %v285_v45 }
  0xb4   : > { %406 = vst [vmem:[%s888_s24 + $0x370] sm:$0xff] %v286_v46 }
  0xb5   : > { %407 = vst [vmem:[%s888_s24 + $0x378] sm:$0xff] %v287_v47 }
  0xb6   : > { %408 = vst [vmem:[%s888_s24 + $0x380] sm:$0xff] %v288_v48 }
  0xb7   : > { %409 = vst [vmem:[%s888_s24 + $0x388] sm:$0xff] %v289_v49 }
  0xb8   : > { %410 = vst [vmem:[%s888_s24 + $0x390] sm:$0xff] %v290_v50 }
  0xb9   : > { %411 = vst [vmem:[%s888_s24 + $0x398] sm:$0xff] %v291_v51  ;;  %423 = sbr.rel (!%p813_p9) target bundleno = 222 (0xde), region = 32 }
  0xba   : > { %412 = vst [vmem:[%s888_s24 + $0x3a0] sm:$0xff] %v292_v52 }
  0xbb   : > { %413 = vst [vmem:[%s888_s24 + $0x3a8] sm:$0xff] %v293_v53 }
  0xbc   : > { %414 = vst [vmem:[%s888_s24 + $0x3b0] sm:$0xff] %v294_v54 }
  0xbd   : > { %415 = vst [vmem:[%s888_s24 + $0x3b8] sm:$0xff] %v295_v55 }
  0xbe   : > { %s1215_s3 = smov (!%p427_p8, %s426_s3), 15 }
  0xbf   : > { %s541_s4 = sshll.u32 %s1215_s3, 6 }
  0xc0   : > { %s430_s15 = ssub.s32 960, %s541_s4 }
  0xc1   : > { %s431_s16 = sshll.u32 %s430_s15, 4 }
  0xc2   : > { %432 = vsyncadd %s417_s17, %s431_s16  ;;  %p1136_p0 = scmp.ne.s32.totalorder %s541_s4, 0  ;;  %s552_s26 = smul.u32 120, %s740_s9 }
  0xc3   : > { %s544_s27 = sshll.u32 %s1215_s3, 3  ;;  %s440_s29 = sshll.u32 %s888_s24, 4  ;;  %s1146_s29 = int_to_ptr.vmem [resolvable:$true] %s440_s29 }
  0xc4   : > { %s437_s12 = scalar_lea.hbm %s1199_s1, %s552_s26  ;;  %s554_s21 = sshll.u32 %s1215_s3, 10 }
  0xc5   : > { %s442_s13 = sshll.u32 %s437_s12, 4  ;;  %s655_s23 = sshra.s32 %s1146_s29, 4  ;;  %s1149_s13 = int_to_ptr.hbm [resolvable:$true] %s442_s13  ;;  %s656_s23 = int_to_ptr.vmem [resolvable:$true] %s655_s23 }
  0xc6   : > { %s657_s30 = sshrl.u32 %s554_s21, 4  ;;  %s753_s9 = smov [#allocation5]  }
  0xc7   : > { %s662_s25 = scalar_lea.vmem %s656_s23, %s657_s30  ;;  %s666_s24 = scalar_lea.vmem %s753_s9, 1920 }
  0xc8   : > { %p663_p9 = scmp.ne.s32.totalorder %s656_s23, %s662_s25  ;;  %p668_p7 = scmp.lt.s32.totalorder %s666_s24, %s662_s25 }
  0xca   : > { %p664_p5 = pnand %p663_p9, %p1136_p0 }
  0xcc   : > { %p665_p6 = pneg %p664_p5 }
  0xce   : > { %p670_p10 = pnand %p668_p7, %p665_p6 }
  0xd0   : > { %673 = shalt.err (!%p670_p10)
}
  0xd1   : > { %s674_s28 = sshra.s32 %s1149_s13, 4  ;;  %s685_s26 = scalar_lea.hbm %s1199_s1, 1024  ;;  %s675_s28 = int_to_ptr.hbm [resolvable:$true] %s674_s28 }
  0xd2   : > { %s681_s4 = scalar_lea.hbm %s675_s28, %s657_s30  ;;  %p686_p3 = scmp.lt.s32.totalorder %s675_s28, %s1199_s1 }
  0xd3   : > { %p682_p13 = scmp.ne.s32.totalorder %s675_s28, %s681_s4  ;;  %p687_p4 = scmp.lt.s32.totalorder %s685_s26, %s681_s4 }
  0xd5   : > { %p683_p1 = pnand %p682_p13, %p1136_p0  ;;  %p688_p8 = por %p687_p4, %p686_p3 }
  0xd7   : > { %p684_p2 = pneg %p683_p1 }
  0xd9   : > { %p689_p9 = pnand %p688_p8, %p684_p2 }
  0xdb   : > { %692 = shalt.err (!%p689_p9)
}
  0xdc   : > { %s754_s12 = smov 1920   ;;  %s755_s23 = smov 2048  }
  0xdd   : > { %448 = dma.vmem_to_hbm [thread:$0]  (%p1136_p0), %s1146_s29, %s554_s21, %s1149_s13, %s417_s17, %s754_s12, %s755_s23, %s544_s27  }
  0xde PF: > { %s457_s30 = sand.u32 1, %s728_s6   ;;  %p560_p5 = pnand %p533_p12, %p820_p11 }
  0xdf   : > { %s458_s25 = scalar_lea.sflag [#allocation4], %s457_s30 }
  0xe0   : > { %p561_p6 = pneg %p560_p5 }
  0xe2   : > { %723 = dma.done.wait (%p561_p6), %s458_s25, 15360  }
  0xe3   : > { %725 = vsyncadd (%p561_p6), %s458_s25, 4294951936  ;;  %s17_s11 = sadd.s32 1, %s748_s11   ;;  %s1205_s6 = smov %s732_s7 }
  0xe4   : > { %p14_p7 = scmp.ge.s32.totalorder %s17_s11, 4   ;;  %s1206_s7 = smov %s736_s8 }
  0xe5   : > { %s1207_s8 = smov %s818_s19  ;;  %s1208_s9 = smov %s744_s10 }
  0xe6   : > { %s1209_s10 = smov %s1211_s14  ;;  %16 = sbr.rel (!%p14_p7) target bundleno = 6 (0x6), region = 69 }
  0xeb   :  { %464 = vsyncpa [#allocation3], 1 }
  0xec   :  { %466 = vsyncpa [#allocation3 + $0x1], 1 }
  0xed   :  { %467 = vsyncpa [#allocation4], 1 }
  0xee   :  { %469 = vsyncpa [#allocation4 + $0x1], 1 }

</bundles_post_ra>
